<compile_context>
chip_gen: v6e
topology: v6e:2x2x1
jax: 0.10.0
libtpu: 0.0.40
codegen_flags: <defaults>
</compile_context>

<pallas_src>
import functools

import jax
import jax.numpy as jnp
from jax.experimental import pallas as pl
from jax.experimental.pallas import tpu as pltpu

EPS = 1e-07
_DEFAULT_TILE_N = 32768   # lanes per grid step; 32K hides step overhead on all gens


def _gce_kernel(pred_ref, labels_ref, out_ref, acc_ref, *,
                q, n_valid, tile_n, tiles_per_split):
    """One (C, tile_n) class-major slab of logits -> lane-wide partial GCE loss."""
    split = pl.program_id(0)        # "parallel" axis (one TensorCore each on v7x)
    i = pl.program_id(1)            # "arbitrary" reduction axis over batch tiles

    @pl.when(i == 0)
    def _init():
        acc_ref[...] = jnp.zeros_like(acc_ref)

    logits = pred_ref[...].astype(jnp.float32)     # (C, tile_n)  classes x batch
    labels = labels_ref[...]                       # (1, tile_n)  int32

    # Numerically stable target-only softmax probability:
    #   p_t = exp(x_t - m) / sum_c exp(x_c - m)
    # Target logit is selected before exponentiation so the (C, tile_n) exp is
    # consumed only by the denominator reduction (no second consumer).
    m = jnp.max(logits, axis=0, keepdims=True)                        # (1, tile_n)
    classes = jax.lax.broadcasted_iota(jnp.int32, logits.shape, 0)    # (C, tile_n)
    x_t = jnp.sum(jnp.where(classes == labels, logits, 0.0),
                  axis=0, keepdims=True)                              # (1, tile_n)
    denom = jnp.sum(jnp.exp(logits - m), axis=0, keepdims=True)       # (1, tile_n)

    # Per-row divide/clamp/pow (C-independent); matches torch.clamp(softmax, eps, 1).
    p_t = jnp.clip(jnp.exp(x_t - m) / denom, EPS, 1.0)                # (1, tile_n)
    loss = (1.0 - jnp.power(p_t, q)) / q                              # (1, tile_n)

    # Mask batch columns outside the real batch: the partial final tile and any
    # clamped duplicate tile (odd tile count across splits) contain unspecified
    # data, which the max-subtraction keeps finite and this mask zeroes out.
    t_global = split * tiles_per_split + i
    col = t_global * tile_n + jax.lax.broadcasted_iota(jnp.int32, (1, tile_n), 1)
    acc_ref[...] += jnp.where(col < n_valid, loss, 0.0)

    @pl.when(i == pl.num_programs(1) - 1)
    def _finalize():
        partial = jnp.sum(acc_ref[...])            # single cross-lane reduce
        out_ref[...] = jnp.full(out_ref.shape, partial, dtype=out_ref.dtype)


def gce_loss(pred, labels, *, num_classes=10, q=0.7, tile_n=None,
             num_splits=None, pred_is_class_major=False):
    """Pallas implementation of GCELoss.forward(pred, labels) -> scalar."""
    if pred_is_class_major:
        c, n = pred.shape
        pred_t = pred                                   # already (C, N): no HBM pass
    else:
        n, c = pred.shape
        # TODO(synk): emit (C, N) upstream so this transpose HBM pass disappears.
        pred_t = jnp.transpose(pred)                    # (C, N)
    assert c == num_classes

    labels_row = labels.astype(jnp.int32).reshape(1, n)  # lane-dense labels

    if tile_n is None:
        # Single full-width block for small batches; 32K-lane tiles otherwise.
        tile_n = n if n <= _DEFAULT_TILE_N else _DEFAULT_TILE_N

    total_tiles = pl.cdiv(n, tile_n)
    if num_splits is None:
        num_splits = 2 if total_tiles >= 2 else 1       # one split per v7x TensorCore
    num_splits = max(1, min(num_splits, total_tiles))
    tiles_per_split = pl.cdiv(total_tiles, num_splits)

    def tile_map(s, i):
        # Clamp so duplicate tiles (odd tile count across splits) stay in range;
        # their contribution is zeroed by the in-kernel column mask.
        return (0, jnp.minimum(s * tiles_per_split + i, total_tiles - 1))

    kernel = functools.partial(_gce_kernel, q=float(q), n_valid=n,
                               tile_n=tile_n, tiles_per_split=tiles_per_split)

    # VMEM budget: double-buffered logits + labels, lane-wide accumulator, and
    # headroom for in-kernel f32 temporaries.  Keeps large tiles compiling on
    # v5e (16 MiB scoped default) while staying inside v7x's 64 MiB VMEM.
    c_pad = ((c + 7) // 8) * 8
    per_step_bytes = (2 * c_pad + 2 * 8 + 8 + 2 * c_pad) * tile_n * 4
    vmem_limit = int(min(64 * 1024 * 1024,
                         max(32 * 1024 * 1024, 2 * per_step_bytes)))

    out = pl.pallas_call(
        kernel,
        out_shape=jax.ShapeDtypeStruct((num_splits, 8, 128), jnp.float32),
        grid=(num_splits, tiles_per_split),
        in_specs=[
            pl.BlockSpec((c, tile_n), tile_map),        # logits slab (class-major)
            pl.BlockSpec((1, tile_n), tile_map),        # labels (lane-dense)
        ],
        out_specs=pl.BlockSpec((1, 8, 128), lambda s, i: (s, 0, 0)),
        scratch_shapes=[pltpu.VMEM((1, tile_n), jnp.float32)],   # lane-wide accum
        compiler_params=pltpu.CompilerParams(
            dimension_semantics=("parallel", "arbitrary"),
            vmem_limit_bytes=vmem_limit),
    )(pred_t, labels_row)

    return jnp.sum(out[:, 0, 0]) / n


def _reference(pred, labels, *, num_classes=10, q=0.7):
    """Pure-JAX reference mirroring the PyTorch module."""
    sm = jax.nn.softmax(pred.astype(jnp.float32), axis=1)
    sm = jnp.clip(sm, EPS, 1.0)
    oh = jax.nn.one_hot(labels, num_classes, dtype=jnp.float32)
    loss = (1.0 - jnp.power(jnp.sum(oh * sm, axis=1), q)) / q
    return loss.mean()


if __name__ == "__main__":
    key = jax.random.PRNGKey(0)
    k1, k2, k3, k4 = jax.random.split(key, 4)

    # Primary small example consistent with the module: batch=8, num_classes=10.
    N, C = 8, 10
    pred = jax.random.normal(k1, (N, C), dtype=jnp.float32)
    labels = jax.random.randint(k2, (N,), 0, C, dtype=jnp.int32)
    out = jax.block_until_ready(gce_loss(pred, labels, num_classes=C, q=0.7))
    ref = _reference(pred, labels, num_classes=C, q=0.7)
    assert jnp.allclose(out, ref, rtol=1e-4, atol=1e-4), (out, ref)

    # Secondary check: multi-tile grid with a partial final tile (no wrapper
    # padding), two-way split, and the clamped-duplicate-tile masking path
    # (300 rows, tile_n=128 -> 3 tiles over 2 splits).
    N2 = 300
    pred2 = jax.random.normal(k3, (N2, C), dtype=jnp.float32)
    labels2 = jax.random.randint(k4, (N2,), 0, C, dtype=jnp.int32)
    out2 = jax.block_until_ready(
        gce_loss(pred2, labels2, num_classes=C, q=0.7, tile_n=128))
    ref2 = _reference(pred2, labels2, num_classes=C, q=0.7)
    assert jnp.allclose(out2, ref2, rtol=1e-4, atol=1e-4), (out2, ref2)

    print("KERNEL_OK")
</pallas_src>

<mosaic_0001>
module attributes {stable_mosaic.version = 11 : i64} {
  func.func @_gce_kernel(%arg0: i32, %arg1: i32, %arg2: memref<10x8xf32, #tpu.memory_space<vmem>>, %arg3: memref<1x8xi32, #tpu.memory_space<vmem>>, %arg4: memref<1x8x128xf32, #tpu.memory_space<vmem>>, %arg5: memref<1x8xf32, #tpu.memory_space<vmem>>) attributes {dimension_semantics = [#tpu.dimension_semantics<parallel>, #tpu.dimension_semantics<arbitrary>], iteration_bounds = array<i64: 1, 1>, scalar_prefetch = 0 : i64, scratch_operands = 1 : i64, tpu.core_type = #tpu.core_type<tc>, window_params = [{transform_indices = @transform_0, window_bounds = array<i64: 10, 8>}, {transform_indices = @transform_1, window_bounds = array<i64: 1, 8>}, {transform_indices = @transform_2, window_bounds = array<i64: 1, 8, 128>}]} {
    %c0_i32 = arith.constant 0 : i32
    %0 = arith.cmpi eq, %arg1, %c0_i32 : i32
    %1 = arith.extui %0 : i1 to i32
    %c0_i32_0 = arith.constant 0 : i32
    %2 = arith.cmpi ne, %1, %c0_i32_0 : i32
    scf.if %2 {
      %cst_20 = arith.constant 0.000000e+00 : f32
      %48 = vector.broadcast %cst_20 : f32 to vector<1x8xf32>
      %c0_21 = arith.constant 0 : index
      %c0_22 = arith.constant 0 : index
      %49 = vector.load %arg5[%c0_21, %c0_22] : memref<1x8xf32, #tpu.memory_space<vmem>>, vector<1x8xf32>
      tpu.vector_store %arg5[%c0_21, %c0_22], %48 {strides = array<i32>} : memref<1x8xf32, #tpu.memory_space<vmem>>, vector<1x8xf32>,
    } else {
    }
    %c0 = arith.constant 0 : index
    %c0_1 = arith.constant 0 : index
    %3 = vector.load %arg2[%c0, %c0_1] : memref<10x8xf32, #tpu.memory_space<vmem>>, vector<10x8xf32>
    %c0_2 = arith.constant 0 : index
    %c0_3 = arith.constant 0 : index
    %4 = vector.load %arg3[%c0_2, %c0_3] : memref<1x8xi32, #tpu.memory_space<vmem>>, vector<1x8xi32>
    %cst = arith.constant dense<0xFF800000> : vector<8xf32>
    %5 = vector.multi_reduction <maximumf>, %3, %cst [0] : vector<10x8xf32> to vector<8xf32>
    %6 = vector.shape_cast %5 : vector<8xf32> to vector<1x8xf32>
    %7 = tpu.iota {dimensions = array<i32: 0>} : vector<10x8xi32>
    %8 = vector.broadcast %4 : vector<1x8xi32> to vector<10x8xi32>
    %9 = arith.cmpi eq, %7, %8 : vector<10x8xi32>
    %cst_4 = arith.constant 0.000000e+00 : f32
    %10 = vector.broadcast %cst_4 : f32 to vector<10x8xf32>
    %11 = arith.select %9, %3, %10 : vector<10x8xi1>, vector<10x8xf32>
    %cst_5 = arith.constant dense<0.000000e+00> : vector<8xf32>
    %12 = vector.multi_reduction <add>, %11, %cst_5 [0] : vector<10x8xf32> to vector<8xf32>
    %13 = vector.shape_cast %12 : vector<8xf32> to vector<1x8xf32>
    %14 = vector.broadcast %6 : vector<1x8xf32> to vector<10x8xf32>
    %15 = arith.subf %3, %14 : vector<10x8xf32>
    %16 = math.exp %15 : vector<10x8xf32>
    %cst_6 = arith.constant dense<0.000000e+00> : vector<8xf32>
    %17 = vector.multi_reduction <add>, %16, %cst_6 [0] : vector<10x8xf32> to vector<8xf32>
    %18 = vector.shape_cast %17 : vector<8xf32> to vector<1x8xf32>
    %19 = arith.subf %13, %6 : vector<1x8xf32>
    %20 = math.exp %19 : vector<1x8xf32>
    %21 = arith.divf %20, %18 : vector<1x8xf32>
    %cst_7 = arith.constant 1.000000e-07 : f32
    %cst_8 = arith.constant 1.000000e+00 : f32
    %22 = vector.broadcast %cst_7 : f32 to vector<1x8xf32>
    %23 = arith.maximumf %22, %21 : vector<1x8xf32>
    %24 = vector.broadcast %cst_8 : f32 to vector<1x8xf32>
    %25 = arith.minimumf %24, %23 : vector<1x8xf32>
    %cst_9 = arith.constant 0.699999988 : f32
    %26 = vector.broadcast %cst_9 : f32 to vector<1x8xf32>
    %27 = math.powf %25, %26 : vector<1x8xf32>
    %cst_10 = arith.constant 1.000000e+00 : f32
    %28 = vector.broadcast %cst_10 : f32 to vector<1x8xf32>
    %29 = arith.subf %28, %27 : vector<1x8xf32>
    %cst_11 = arith.constant 0.699999988 : f32
    %30 = vector.broadcast %cst_11 : f32 to vector<1x8xf32>
    %31 = arith.divf %29, %30 : vector<1x8xf32>
    %c1_i32 = arith.constant 1 : i32
    %32 = arith.muli %arg0, %c1_i32 : i32
    %33 = arith.addi %32, %arg1 : i32
    %c8_i32 = arith.constant 8 : i32
    %34 = arith.muli %33, %c8_i32 : i32
    %35 = tpu.iota {dimensions = array<i32: 1>} : vector<1x8xi32>
    %36 = vector.broadcast %34 : i32 to vector<1x8xi32>
    %37 = arith.addi %36, %35 : vector<1x8xi32>
    %c0_12 = arith.constant 0 : index
    %c0_13 = arith.constant 0 : index
    %38 = vector.load %arg5[%c0_12, %c0_13] : memref<1x8xf32, #tpu.memory_space<vmem>>, vector<1x8xf32>
    %c8_i32_14 = arith.constant 8 : i32
    %39 = vector.broadcast %c8_i32_14 : i32 to vector<1x8xi32>
    %40 = arith.cmpi slt, %37, %39 : vector<1x8xi32>
    %cst_15 = arith.constant 0.000000e+00 : f32
    %41 = vector.broadcast %cst_15 : f32 to vector<1x8xf32>
    %42 = arith.select %40, %31, %41 : vector<1x8xi1>, vector<1x8xf32>
    %43 = arith.addf %38, %42 : vector<1x8xf32>
    %c0_16 = arith.constant 0 : index
    %c0_17 = arith.constant 0 : index
    %44 = vector.load %arg5[%c0_16, %c0_17] : memref<1x8xf32, #tpu.memory_space<vmem>>, vector<1x8xf32>
    tpu.vector_store %arg5[%c0_16, %c0_17], %43 {strides = array<i32>} : memref<1x8xf32, #tpu.memory_space<vmem>>, vector<1x8xf32>,
    %c0_i32_18 = arith.constant 0 : i32
    %45 = arith.cmpi eq, %arg1, %c0_i32_18 : i32
    %46 = arith.extui %45 : i1 to i32
    %c0_i32_19 = arith.constant 0 : i32
    %47 = arith.cmpi ne, %46, %c0_i32_19 : i32
    scf.if %47 {
      %c0_20 = arith.constant 0 : index
      %c0_21 = arith.constant 0 : index
      %48 = vector.load %arg5[%c0_20, %c0_21] : memref<1x8xf32, #tpu.memory_space<vmem>>, vector<1x8xf32>
      %49 = vector.shape_cast %48 : vector<1x8xf32> to vector<1x1x8xf32>
      %cst_22 = arith.constant dense<0.000000e+00> : vector<1xf32>
      %50 = vector.multi_reduction <add>, %49, %cst_22 [1, 2] : vector<1x1x8xf32> to vector<1xf32>
      %51 = vector.shape_cast %50 : vector<1xf32> to vector<1x1x1xf32>
      %52 = vector.extract %51[0, 0, 0] : f32 from vector<1x1x1xf32>
      %53 = vector.broadcast %52 : f32 to vector<1x8x128xf32>
      %c0_23 = arith.constant 0 : index
      %c0_24 = arith.constant 0 : index
      %c0_25 = arith.constant 0 : index
      %54 = vector.load %arg4[%c0_23, %c0_24, %c0_25] : memref<1x8x128xf32, #tpu.memory_space<vmem>>, vector<1x8x128xf32>
      tpu.vector_store %arg4[%c0_23, %c0_24, %c0_25], %53 {strides = array<i32>} : memref<1x8x128xf32, #tpu.memory_space<vmem>>, vector<1x8x128xf32>,
    } else {
    }
    return
  }
  func.func @transform_0(%arg0: i32, %arg1: i32) -> (i32, i32) {
    %c1_i32 = arith.constant 1 : i32
    %0 = arith.muli %arg0, %c1_i32 : i32
    %1 = arith.addi %0, %arg1 : i32
    %c0_i32 = arith.constant 0 : i32
    %2 = arith.minsi %1, %c0_i32 : i32
    %c0_i32_0 = arith.constant 0 : i32
    %c0_i32_1 = arith.constant 0 : i32
    return %c0_i32_0, %2 : i32, i32
  }
  func.func @transform_1(%arg0: i32, %arg1: i32) -> (i32, i32) {
    %c1_i32 = arith.constant 1 : i32
    %0 = arith.muli %arg0, %c1_i32 : i32
    %1 = arith.addi %0, %arg1 : i32
    %c0_i32 = arith.constant 0 : i32
    %2 = arith.minsi %1, %c0_i32 : i32
    %c0_i32_0 = arith.constant 0 : i32
    %c0_i32_1 = arith.constant 0 : i32
    return %c0_i32_0, %2 : i32, i32
  }
  func.func @transform_2(%arg0: i32, %arg1: i32) -> (i32, i32, i32) {
    %c0_i32 = arith.constant 0 : i32
    %c0_i32_0 = arith.constant 0 : i32
    %c0_i32_1 = arith.constant 0 : i32
    return %arg0, %c0_i32, %c0_i32_0 : i32, i32, i32
  }
}

</mosaic_0001>

<bundles_post_ra>
// kernel: tpu_custom_call.1
= control target key start
LH: loop header
LB: loop body
LE: loop exit
PB: predicated region body
PF: predicated region fallthrough
CT: control target
= control target key end

     0   :  { %vm67_vm0 = vcmask 57344   ;;  %vm72_vm1 = vcmask 64512   ;;  %v83_v2 = vlaneseq  ;;  %v245_v3 = vmov 0.0   ;;  %s285_s0 = inlined_call_operand.vmem [shape: f32[10,8], index: 0, kind: input, shape index: {}]   ;;  %s286_s1 = inlined_call_operand.vmem [shape: s32[1,8], index: 1, kind: input, shape index: {}]   ;;  %s287_s2 = inlined_call_operand.hbm [shape: f32[1,8,128], index: 2, kind: output, shape index: {}]  }
   0x1   :  { %v69_v0 = vld [vmem:[%s285_s0] sm:$0xff]  ;;  %v70_v1 = vld [vmem:[%s285_s0 + $0x8] sm:$0x3]  ;;  %68 = vst.msk [vmem:[#allocation2] sm:$0x1] %vm67_vm0, %v245_v3  ;;  %vm74_vm2 = vcmask 58368  }
   0x2   :  { %v180_v4 = vld [vmem:[%s286_s1] ss:$0 sm:$0xff]  ;;  %v73_v5 = vsel %vm72_vm1, %v69_v0, -inf }
   0x3   :  { %7 = vsyncpa [#allocation4], 0  ;;  %v75_v6 = vsel %vm74_vm2, %v70_v1, -inf  ;;  %v84_v7 = vshrl.u32 %v83_v2, 7  ;;  %v132_v56 = vand.u32 127, %v83_v2  ;;  %s246_s0 = smov [#allocation3]  }
   0x4   :  { %v76_v8 = vmax.f32 %v73_v5, %v75_v6  ;;  %s163_s1 = sshll.u32 %s246_s0, 4  ;;  %s164_s1 = int_to_ptr.vmem [resolvable:$true] %s163_s1 }
   0x5   :  { %v85_v9 = vadd.s32 8, %v84_v7  ;;  %vm90_vm3 = vcmp.eq.s32.totalorder %v84_v7, %v180_v4  ;;  %vm136_vm10 = vcmp.lt.s32.totalorder %v132_v56, 8  ;;  %s223_s16 = scalar_lea.vmem %s164_s1, 128  ;;  %p228_p1 = scmp.lt.s32.totalorder %s164_s1, %s164_s1 }
   0x6   :  { %v77_v10 = vrot.slane %v76_v8, 4  ;;  %v92_v12 = vsel %vm90_vm3, %v69_v0, 0.0  ;;  %p224_p0 = scmp.ne.s32.totalorder %s164_s1, %s223_s16  ;;  %p229_p2 = scmp.lt.s32.totalorder %s223_s16, %s223_s16 }
   0x7   :  { %vm91_vm4 = vcmp.eq.s32.totalorder %v85_v9, %v180_v4  ;;  %v94_v15 = vsel %vm72_vm1, %v92_v12, 0.0 }
   0x8   :  { %v78_v11 = vmax.f32 %v76_v8, %v77_v10  ;;  %v93_v13 = vsel %vm91_vm4, %v70_v1, 0.0  ;;  %v135_v61 = vld [vmem:[#allocation2] sm:$0x1]  ;;  %p230_p3 = por %p229_p2, %p228_p1 }
   0x9   :  { %v95_v16 = vsel %vm74_vm2, %v93_v13, 0.0 }
   0xa   :  { %v79_v14 = vrot.slane %v78_v11, 2  ;;  %v96_v19 = vadd.f32 %v95_v16, %v94_v15  ;;  %p231_p4 = pnand %p230_p3, %p224_p0 }
   0xc   :  { %v80_v17 = vmax.f32 %v78_v11, %v79_v14  ;;  %v97_v21 = vrot.slane %v96_v19, 4 }
   0xe   :  { %v81_v18 = vrot.slane %v80_v17, 1  ;;  %v98_v26 = vadd.f32 %v97_v21, %v96_v19 }
  0x10   :  { %v82_v20 = vmax.f32 %v80_v17, %v81_v18  ;;  %v99_v27 = vrot.slane %v98_v26, 2 }
  0x12   :  { %v103_v22 = vsub.f32 %v69_v0, %v82_v20  ;;  %v104_v23 = vsub.f32 %v70_v1, %v82_v20  ;;  %v100_v28 = vadd.f32 %v99_v27, %v98_v26 }
  0x14   :  { %v105_v24 = vmul.f32 1.442695, %v103_v22  ;;  %v107_v25 = vmul.f32 1.442695, %v104_v23  ;;  %v101_v29 = vrot.slane %v100_v28, 1 }
  0x16   :  { %211 = vpow2.f32 %v105_v24  ;;  %v102_v34 = vadd.f32 %v101_v29, %v100_v28 }
  0x17   :  { %213 = vpow2.f32 %v107_v25 }
  0x18   :  { %v118_v38 = vsub.f32 %v102_v34, %v82_v20 }
  0x1a   :  { %v119_v41 = vmul.f32 1.442695, %v118_v38 }
  0x1c   :  { %215 = vpow2.f32 %v119_v41 }
  0x23   :  { %v212_v30 = vpop.eup %211 }
  0x24   :  { %v214_v31 = vpop.eup %213  ;;  %v109_v32 = vsel %vm72_vm1, %v212_v30, 0.0 }
  0x25   :  { %v110_v33 = vsel %vm74_vm2, %v214_v31, 0.0 }
  0x26   :  { %v111_v35 = vadd.f32 %v110_v33, %v109_v32 }
  0x28   :  { %v112_v36 = vrot.slane %v111_v35, 4 }
  0x29   :  { %v216_v44 = vpop.eup %215 }
  0x2a   :  { %v113_v37 = vadd.f32 %v112_v36, %v111_v35 }
  0x2c   :  { %v114_v39 = vrot.slane %v113_v37, 2 }
  0x2e   :  { %v115_v40 = vadd.f32 %v114_v39, %v113_v37 }
  0x30   :  { %v116_v42 = vrot.slane %v115_v40, 1 }
  0x32   :  { %v117_v43 = vadd.f32 %v116_v42, %v115_v40 }
  0x34   :  { %217 = vrcp.f32 %v117_v43 }
  0x41   :  { %v218_v45 = vpop.eup %217 }
  0x42   :  { %v122_v46 = vmul.f32 %v218_v45, %v216_v44 }
  0x44   :  { %v123_v47 = vmax.f32 %v122_v46, 1e-07 }
  0x46   :  { %v124_v48 = vmin.f32 %v123_v47, 1.0 }
  0x48   :  { %v185_v49 = vand.u32 2147483647, %v124_v48  ;;  %vm189_vm5 = vcmp.lt.f32.partialorder %v124_v48, 0  ;;  %vm190_vm6 = vcmp.eq.f32.partialorder %v124_v48, 0  ;;  %vm202_vm8 = vcmp.ne.f32.partialorder %v124_v48, %v124_v48 }
  0x49   :  { %vm191_vm9 = vcmp.eq.f32.partialorder %v124_v48, 1065353216 }
  0x4a   :  { %219 = vlog2.f32 %v185_v49  ;;  %vm194_vm7 = vcmp.eq.f32.partialorder %v185_v49, 2139095040 }
  0x57   :  { %v220_v50 = vpop.eup %219 }
  0x58   :  { %v187_v51 = vmul.f32 0.7, %v220_v50 }
  0x5a   :  { %221 = vpow2.f32 %v187_v51 }
  0x67   :  { %v222_v52 = vpop.eup %221 }
  0x68   :  { %v195_v53 = vsel %vm189_vm5, 2143289344, %v222_v52 }
  0x69   :  { %v196_v54 = vsel %vm190_vm6, 0, %v195_v53 }
  0x6a   :  { %v201_v55 = vsel %vm194_vm7, 2139095040, %v196_v54 }
  0x6b   :  { %v205_v57 = vsel %vm202_vm8, 2143289344, %v201_v55 }
  0x6c   :  { %v206_v58 = vsel %vm191_vm9, 1065353216, %v205_v57 }
  0x6d   :  { %v126_v59 = vsub.f32 1.0, %v206_v58 }
  0x6f   :  { %v128_v60 = vmul.f32 1.4285715, %v126_v59 }
  0x71   :  { %v137_v62 = vsel %vm136_vm10, %v128_v60, 0.0 }
  0x72   :  { %v138_v63 = vadd.f32 %v137_v62, %v135_v61 }
  0x74   :  { %140 = vst.msk [vmem:[#allocation2] sm:$0x1] %vm67_vm0, %v138_v63 }
  0x7b   :  { %v144_v0 = vld [vmem:[#allocation2] sm:$0x1] }
  0x7c   :  { %v145_v1 = vsel %vm67_vm0, %v144_v0, 0.0 }
  0x7d   :  { %146 = vadd.xlane.f32.xlu0 %v145_v1 }
 0x106   :  { %v147_v3 = vpop.xlane.xlu0 %146 }
 0x107   :  { %v148_v4 = vrot.slane %v147_v3, 4 }
 0x109   :  { %v149_v5 = vadd.f32 %v148_v4, %v147_v3 }
 0x10b   :  { %v150_v6 = vrot.slane %v149_v5, 2 }
 0x10d   :  { %v151_v7 = vadd.f32 %v150_v6, %v149_v5 }
 0x10f   :  { %v152_v2 = vrot.slane %v151_v7, 1 }
 0x111   :  { %v153_v8 = vadd.f32 %v152_v2, %v151_v7 }
 0x113   :  { %207 = vpush %v153_v8 }
 0x144   :  { %s208_s15 = spop %207 }
 0x145   :  { %v155_v9 = vstv %s208_s15 }
 0x146   :  { %156 = vst [vmem:[#allocation3] sm:$0xff] %v155_v9 }
 0x147   :  { %234 = shalt.err (!%p231_p4)
}
 0x148   :  { %166 = dma.vmem_to_hbm [thread:$0]  %s164_s1, 128, %s287_s2, [#allocation4]  }
 0x149   :  { %243 = dma.done.wait [#allocation4], 128  }
 0x14a   :  { %244 = vsyncadd [#allocation4], 4294967168 }
 0x14b   :  { %170 = vsyncpa [#allocation4], 1 }

</bundles_post_ra>
